<compile_context>
chip_gen: v5e
topology: v5e:2x2
jax: 0.10.0
libtpu: 0.0.40
codegen_flags: <defaults>
</compile_context>

<pallas_src>
import numpy as np

import jax
import jax.numpy as jnp
from jax.experimental import pallas as pl
from jax.experimental.pallas import tpu as pltpu


def _round_up(x: int, m: int) -> int:
    return -(-x // m) * m


def _linear_interp_matrix(input_dim: int, output_dim: int) -> np.ndarray:
    """(input_dim, output_dim) matrix s.t. x @ W == F.interpolate(
    x, size=output_dim, mode='linear', align_corners=True)."""
    W = np.zeros((input_dim, output_dim), dtype=np.float32)
    if output_dim == 1:
        W[0, 0] = 1.0
        return W
    scale = (input_dim - 1) / (output_dim - 1)
    for j in range(output_dim):
        src = j * scale
        lo = min(int(np.floor(src)), input_dim - 1)
        hi = min(lo + 1, input_dim - 1)
        frac = src - lo
        W[lo, j] += 1.0 - frac
        W[hi, j] += frac
    return W


def _packed_interp_matrix(input_dim: int, output_dim: int, pack: int) -> np.ndarray:
    """Block-diagonal kron(I_pack, W): (pack*input_dim, pack*output_dim), f32."""
    W = _linear_interp_matrix(input_dim, output_dim)
    return np.kron(np.eye(pack, dtype=np.float32), W)


def _default_pack() -> int:
    """16 for the 256-wide MXUs (v6e/v7x), 8 otherwise (v5e and older)."""
    try:
        kind = jax.devices()[0].device_kind.lower()
    except Exception:
        return 8
    if "v6" in kind or "v7" in kind:
        return 16
    return 8


def _sublane_multiple(dtype) -> int:
    """Native sublane packing multiple for a dtype (rows per full sublane group)."""
    return {4: 8, 2: 16, 1: 32}.get(jnp.dtype(dtype).itemsize, 8)


def _interp_kernel(x_ref, w_ref, o_ref):
    # (TM, K) @ (K, N) -> (TM, N) on the MXU, f32 accumulation.
    # x is in its native dtype; w is kept in f32 for coefficient precision.
    o_ref[...] = jnp.dot(
        x_ref[...], w_ref[...], preferred_element_type=jnp.float32
    ).astype(o_ref.dtype)


def interpolate_forward(
    x: jnp.ndarray,
    output_dim: int,
    *,
    tile_rows: int = 4096,       # packed super-rows per grid step
    pack: int | None = None,     # rows per super-row; None -> per-chip default
    min_pallas_rows: int = 4096, # below this, use the fused-XLA fast path
) -> jnp.ndarray:
    """x: (batch, seq, input_dim) -> (batch, seq, output_dim), native dtype."""
    batch, seq, input_dim = x.shape
    dtype = x.dtype
    M = batch * seq

    w_small = jnp.asarray(_linear_interp_matrix(input_dim, output_dim))  # f32

    # ---- Small-M fast path: kernel launch + pad/reshape overhead dominates.
    if M < min_pallas_rows:
        y = jnp.einsum("bsd,de->bse", x.astype(jnp.float32), w_small)
        return y.astype(dtype)

    if pack is None:
        pack = _default_pack()
    sub = _sublane_multiple(dtype)

    K = pack * input_dim      # 128 (pack=8) or 256 (pack=16) for input_dim=16
    N = pack * output_dim     # 256 (pack=8) or 512 (pack=16) for output_dim=32

    # ---- Row padding: only to the packing factor (zeros -> padded lanes inside
    # a kept super-row stay finite).  Additionally ensure at least one full
    # sublane group of packed rows (tiny, only triggers for very small M).
    M_pad = _round_up(M, pack)
    Mp = M_pad // pack
    if Mp < sub:
        Mp = sub
        M_pad = Mp * pack

    x2d = x.reshape(M, input_dim)
    if M_pad != M:
        x2d = jnp.pad(x2d, ((0, M_pad - M), (0, 0)))
    xp = x2d.reshape(Mp, K)   # free row-major reinterpretation

    # ---- Tile selection: big tiles (memory-bound), dtype-native sublane
    # rounding, and >= 2 grid steps whenever possible so both v7x TCs run.
    if Mp > sub:
        tm = min(tile_rows, _round_up(-(-Mp // 2), sub))
    else:
        tm = sub
    tm = max(sub, min(tm, _round_up(Mp, sub)))
    grid = pl.cdiv(Mp, tm)    # partial last block is clipped by Pallas

    w = jnp.asarray(_packed_interp_matrix(input_dim, output_dim, pack))  # f32

    isz = jnp.dtype(dtype).itemsize
    # Double-buffered input + output blocks, double-buffered (resident) weight,
    # plus a little headroom.  Capped at 56 MiB (v7x VMEM is 64 MiB physical).
    vmem_need = 2 * tm * (K + N) * isz + 2 * K * N * 4
    vmem_limit = int(min(56 << 20, max(32 << 20, vmem_need + (2 << 20))))

    cost = pl.CostEstimate(
        flops=2 * Mp * K * N,
        transcendentals=0,
        bytes_accessed=Mp * (K + N) * isz + K * N * 4,
    )

    out_p = pl.pallas_call(
        _interp_kernel,
        out_shape=jax.ShapeDtypeStruct((Mp, N), dtype),
        grid_spec=pltpu.PrefetchScalarGridSpec(
            num_scalar_prefetch=0,
            grid=(grid,),
            in_specs=[
                pl.BlockSpec((tm, K), lambda i: (i, 0)),
                # Constant index_map -> weight fetched once, stays resident.
                pl.BlockSpec((K, N), lambda i: (0, 0)),
            ],
            out_specs=pl.BlockSpec((tm, N), lambda i: (i, 0)),
        ),
        compiler_params=pltpu.CompilerParams(
            dimension_semantics=("parallel",),
            vmem_limit_bytes=vmem_limit,
        ),
        cost_estimate=cost,
    )(xp, w)

    out2d = out_p.reshape(M_pad, output_dim)
    if M_pad != M:
        out2d = out2d[:M]
    return out2d.reshape(batch, seq, output_dim)


if __name__ == "__main__":
    # Small shapes consistent with the ctor signature:
    #   input_dim=16, output_dim=32, sequence_length=8, batch=2.
    batch, seq, input_dim, output_dim = 2, 8, 16, 32

    key = jax.random.PRNGKey(0)
    x_small = jax.random.normal(key, (batch, seq, input_dim), dtype=jnp.float32)

    w_ref = jnp.asarray(_linear_interp_matrix(input_dim, output_dim))
    y_ref_small = jnp.einsum("bsd,de->bse", x_small, w_ref)

    # 1) Default path at the module's small shapes (small-M fast path).
    y_fast = jax.block_until_ready(interpolate_forward(x_small, output_dim))
    np.testing.assert_allclose(
        np.asarray(y_fast), np.asarray(y_ref_small), rtol=1e-5, atol=1e-5
    )

    # 2) Force the Pallas kernel at the same small shape (exercises the
    #    PACK-alignment pad and the single-tile grid).
    y_pallas = jax.block_until_ready(
        interpolate_forward(x_small, output_dim, min_pallas_rows=0)
    )
    np.testing.assert_allclose(
        np.asarray(y_pallas), np.asarray(y_ref_small), rtol=1e-5, atol=1e-5
    )
    assert y_pallas.shape == (batch, seq, output_dim)

    # 3) Force the Pallas kernel at a slightly larger (still small) shape so
    #    the grid has >= 2 parallel steps and all blocks are full-width.
    x_med = jax.random.normal(jax.random.PRNGKey(0), (2, 512, input_dim), dtype=jnp.float32)
    y_med = jax.block_until_ready(
        interpolate_forward(x_med, output_dim, min_pallas_rows=0)
    )
    y_ref_med = jnp.einsum("bsd,de->bse", x_med, w_ref)
    np.testing.assert_allclose(
        np.asarray(y_med), np.asarray(y_ref_med), rtol=1e-5, atol=1e-5
    )

    print("KERNEL_OK")
</pallas_src>

<mosaic_0001>
module attributes {stable_mosaic.version = 11 : i64} {
  func.func @_interp_kernel(%arg0: i32, %arg1: memref<8x128xf32, #tpu.memory_space<vmem>>, %arg2: memref<128x256xf32, #tpu.memory_space<vmem>>, %arg3: memref<8x256xf32, #tpu.memory_space<vmem>>) attributes {dimension_semantics = [#tpu.dimension_semantics<parallel>], iteration_bounds = array<i64: 1>, scalar_prefetch = 0 : i64, scratch_operands = 0 : i64, tpu.core_type = #tpu.core_type<tc>, window_params = [{transform_indices = @transform_0, window_bounds = array<i64: 8, 128>}, {pipeline_mode = #tpu.pipeline_mode<synchronous>, transform_indices = @transform_1, window_bounds = array<i64: 128, 256>}, {transform_indices = @transform_2, window_bounds = array<i64: 8, 256>}]} {
    %c0 = arith.constant 0 : index
    %c0_0 = arith.constant 0 : index
    %0 = vector.load %arg1[%c0, %c0_0] : memref<8x128xf32, #tpu.memory_space<vmem>>, vector<8x128xf32>
    %c0_1 = arith.constant 0 : index
    %c0_2 = arith.constant 0 : index
    %1 = vector.load %arg2[%c0_1, %c0_2] : memref<128x256xf32, #tpu.memory_space<vmem>>, vector<128x256xf32>
    %cst = arith.constant dense<0.000000e+00> : vector<8x256xf32>
    %2 = tpu.matmul %0, %1, %cst {dimension_numbers = #tpu.dot_dimension_numbers<[1], [0], [0], [1], [0, 0, 1, 1], [], []>} : vector<8x128xf32>, vector<128x256xf32>, vector<8x256xf32> -> vector<8x256xf32>
    %c0_3 = arith.constant 0 : index
    %c0_4 = arith.constant 0 : index
    %3 = vector.load %arg3[%c0_3, %c0_4] : memref<8x256xf32, #tpu.memory_space<vmem>>, vector<8x256xf32>
    tpu.vector_store %arg3[%c0_3, %c0_4], %2 {strides = array<i32>} : memref<8x256xf32, #tpu.memory_space<vmem>>, vector<8x256xf32>,
    return
  }
  func.func @transform_0(%arg0: i32) -> (i32, i32) {
    %c0_i32 = arith.constant 0 : i32
    %c0_i32_0 = arith.constant 0 : i32
    return %arg0, %c0_i32 : i32, i32
  }
  func.func @transform_1(%arg0: i32) -> (i32, i32) {
    %c0_i32 = arith.constant 0 : i32
    %c0_i32_0 = arith.constant 0 : i32
    %c0_i32_1 = arith.constant 0 : i32
    return %c0_i32, %c0_i32_0 : i32, i32
  }
  func.func @transform_2(%arg0: i32) -> (i32, i32) {
    %c0_i32 = arith.constant 0 : i32
    %c0_i32_0 = arith.constant 0 : i32
    return %arg0, %c0_i32 : i32, i32
  }
}

</mosaic_0001>

<bundles_post_ra>
// kernel: tpu_custom_call.1
= control target key start
LH: loop header
LB: loop body
LE: loop exit
PB: predicated region body
PF: predicated region fallthrough
CT: control target
= control target key end

     0   :  { %7 = vsyncpa [#allocation3], 0  ;;  %s247_s0 = inlined_call_operand.hbm [shape: f32[8,128], index: 0, kind: input, shape index: {}]   ;;  %s248_s1 = inlined_call_operand.hbm [shape: f32[128,256], index: 1, kind: input, shape index: {}]   ;;  %s249_s2 = inlined_call_operand.hbm [shape: f32[8,256], index: 2, kind: output, shape index: {}]  }
   0x1   :  { %8 = vsyncpa [#allocation6], 0 }
   0x2   :  { %9 = vsyncpa [#allocation4], 0  ;;  %s15_s11 = sshll.u32 %s247_s0, 4  ;;  %s218_s12 = smov [#allocation2]   ;;  %s16_s11 = int_to_ptr.hbm [resolvable:$true] %s15_s11 }
   0x3   :  { %s17_s13 = sshll.u32 %s218_s12, 4  ;;  %s25_s16 = sshll.u32 %s248_s1, 4  ;;  %s18_s13 = int_to_ptr.vmem [resolvable:$true] %s17_s13  ;;  %s26_s16 = int_to_ptr.hbm [resolvable:$true] %s25_s16 }
   0x4   :  { %20 = dma.hbm_to_vmem [thread:$0]  %s16_s11, 128, %s18_s13, [#allocation3]  }
   0x5   :  { %s219_s17 = smov [#allocation5]   ;;  %s220_s19 = smov 256  }
   0x6   :  { %s27_s18 = sshll.u32 %s219_s17, 4  ;;  %s221_s20 = smov 16   ;;  %s28_s18 = int_to_ptr.vmem [resolvable:$true] %s27_s18 }
   0x7   :  { %33 = dma.hbm_to_vmem [thread:$0]  %s26_s16, 4096, %s28_s18, [#allocation6], %s220_s19, %s220_s19, %s221_s20  }
   0x8   :  { %212 = dma.done.wait [#allocation3], 128  }
   0x9   :  { %213 = vsyncadd [#allocation3], 4294967168 }
   0xa   :  { %214 = dma.done.wait [#allocation6], 4096  }
   0xb   :  { %215 = vsyncadd [#allocation6], 4294963200  ;;  %v73_v0 = vld [vmem:[#allocation5 + $0xf0] sm:$0xff]  ;;  %v74_v1 = vld [vmem:[#allocation5 + $0xf8] sm:$0xff]  ;;  %s222_s0 = smov [#allocation7]   ;;  %s124_s23 = sshll.u32 %s249_s2, 4  ;;  %s125_s23 = int_to_ptr.hbm [resolvable:$true] %s124_s23 }
   0xc   :  { %v71_v2 = vld [vmem:[#allocation5 + $0xe0] sm:$0xff]  ;;  %75 = vmatpush.msra.mxu0 %v73_v0  ;;  %95 = vmatpush.msra.mxu1 %v74_v1  ;;  %v72_v3 = vld [vmem:[#allocation5 + $0xe8] sm:$0xff]  ;;  %v69_v4 = vld [vmem:[#allocation5 + $0xd0] sm:$0xff]  ;;  %s122_s1 = sshll.u32 %s222_s0, 4  ;;  %s123_s1 = int_to_ptr.vmem [resolvable:$true] %s122_s1 }
   0xd   :  { %v70_v5 = vld [vmem:[#allocation5 + $0xd8] sm:$0xff]  ;;  %v67_v6 = vld [vmem:[#allocation5 + $0xc0] sm:$0xff]  ;;  %v68_v7 = vld [vmem:[#allocation5 + $0xc8] sm:$0xff] }
   0xe   :  { %76 = vmatpush.msra.mxu0 %v71_v2  ;;  %96 = vmatpush.msra.mxu1 %v72_v3  ;;  %v65_v8 = vld [vmem:[#allocation5 + $0xb0] sm:$0xff]  ;;  %v66_v9 = vld [vmem:[#allocation5 + $0xb8] sm:$0xff]  ;;  %v63_v10 = vld [vmem:[#allocation5 + $0xa0] sm:$0xff] }
   0xf   :  { %v64_v11 = vld [vmem:[#allocation5 + $0xa8] sm:$0xff]  ;;  %v61_v12 = vld [vmem:[#allocation5 + $0x90] sm:$0xff]  ;;  %v62_v13 = vld [vmem:[#allocation5 + $0x98] sm:$0xff] }
  0x10   :  { %77 = vmatpush.msra.mxu0 %v69_v4  ;;  %97 = vmatpush.msra.mxu1 %v70_v5  ;;  %v59_v14 = vld [vmem:[#allocation5 + $0x80] sm:$0xff]  ;;  %v60_v15 = vld [vmem:[#allocation5 + $0x88] sm:$0xff]  ;;  %v57_v16 = vld [vmem:[#allocation5 + $0x70] sm:$0xff] }
  0x11   :  { %v58_v17 = vld [vmem:[#allocation5 + $0x78] sm:$0xff]  ;;  %v55_v18 = vld [vmem:[#allocation5 + $0x60] sm:$0xff]  ;;  %v56_v19 = vld [vmem:[#allocation5 + $0x68] sm:$0xff] }
  0x12   :  { %78 = vmatpush.msra.mxu0 %v67_v6  ;;  %98 = vmatpush.msra.mxu1 %v68_v7  ;;  %v53_v20 = vld [vmem:[#allocation5 + $0x50] sm:$0xff]  ;;  %v54_v21 = vld [vmem:[#allocation5 + $0x58] sm:$0xff]  ;;  %v51_v22 = vld [vmem:[#allocation5 + $0x40] sm:$0xff] }
  0x13   :  { %v52_v23 = vld [vmem:[#allocation5 + $0x48] sm:$0xff]  ;;  %v49_v24 = vld [vmem:[#allocation5 + $0x30] sm:$0xff]  ;;  %v50_v25 = vld [vmem:[#allocation5 + $0x38] sm:$0xff] }
  0x14   :  { %79 = vmatpush.msra.mxu0 %v65_v8  ;;  %99 = vmatpush.msra.mxu1 %v66_v9  ;;  %v47_v26 = vld [vmem:[#allocation5 + $0x20] sm:$0xff]  ;;  %v48_v27 = vld [vmem:[#allocation5 + $0x28] sm:$0xff]  ;;  %v45_v28 = vld [vmem:[#allocation5 + $0x10] sm:$0xff] }
  0x15   :  { %v46_v29 = vld [vmem:[#allocation5 + $0x18] sm:$0xff]  ;;  %v43_v30 = vld [vmem:[#allocation5] sm:$0xff]  ;;  %v44_v31 = vld [vmem:[#allocation5 + $0x8] sm:$0xff] }
  0x16   :  { %80 = vmatpush.msra.mxu0 %v63_v10  ;;  %100 = vmatpush.msra.mxu1 %v64_v11  ;;  %v42_v32 = vld [vmem:[#allocation2] sm:$0xff] }
  0x18   :  { %81 = vmatpush.msra.mxu0 %v61_v12  ;;  %101 = vmatpush.msra.mxu1 %v62_v13 }
  0x1a   :  { %82 = vmatpush.msra.mxu0 %v59_v14  ;;  %102 = vmatpush.msra.mxu1 %v60_v15 }
  0x1c   :  { %83 = vmatpush.msra.mxu0 %v57_v16  ;;  %103 = vmatpush.msra.mxu1 %v58_v17 }
  0x1e   :  { %84 = vmatpush.msra.mxu0 %v55_v18  ;;  %104 = vmatpush.msra.mxu1 %v56_v19 }
  0x20   :  { %85 = vmatpush.msra.mxu0 %v53_v20  ;;  %105 = vmatpush.msra.mxu1 %v54_v21 }
  0x22   :  { %86 = vmatpush.msra.mxu0 %v51_v22  ;;  %106 = vmatpush.msra.mxu1 %v52_v23 }
  0x24   :  { %87 = vmatpush.msra.mxu0 %v49_v24  ;;  %107 = vmatpush.msra.mxu1 %v50_v25 }
  0x26   :  { %88 = vmatpush.msra.mxu0 %v47_v26  ;;  %108 = vmatpush.msra.mxu1 %v48_v27 }
  0x28   :  { %89 = vmatpush.msra.mxu0 %v45_v28  ;;  %109 = vmatpush.msra.mxu1 %v46_v29 }
  0x2a   :  { %90 = vmatpush.msra.mxu0 %v43_v30  ;;  %110 = vmatpush.msra.mxu1 %v44_v31 }
  0x2b   :  { %91 = vmatmul.f32.vlgmr.msra.gmra.mxu0 %v42_v32  ;;  %111 = vmatmul.f32.vlgmr.msra.gmra.mxu1 %v42_v32 }
  0xa8   :  { %v92_v33 = vpop.f32.mrf.mxu0  ;;  %v112_v34 = vpop.f32.mrf.mxu1 }
  0xa9   :  { %115 = vst [vmem:[#allocation7] sm:$0xff] %v92_v33 }
  0xaa   :  { %116 = vst [vmem:[#allocation7 + $0x8] sm:$0xff] %v112_v34 }
  0xab   :  { %127 = dma.vmem_to_hbm [thread:$0]  %s123_s1, 256, %s125_s23, [#allocation4]  }
  0xac   :  { %216 = dma.done.wait [#allocation4], 256  }
  0xad   :  { %217 = vsyncadd [#allocation4], 4294967040 }
  0xae   :  { %132 = vsyncpa [#allocation3], 1 }
  0xaf   :  { %133 = vsyncpa [#allocation6], 1 }
  0xb0   :  { %134 = vsyncpa [#allocation4], 1 }

</bundles_post_ra>
